<compile_context>
chip_gen: v6e
topology: v6e:2x2x1
jax: 0.10.0
libtpu: 0.0.40
codegen_flags: <defaults>
</compile_context>

<pallas_src>
import math

import jax
import jax.numpy as jnp
from jax import lax
from jax.experimental import pallas as pl
from jax.experimental.pallas import tpu as pltpu


def _round_up(v, m):
    return ((v + m - 1) // m) * m


def _select_tiles(B, C, F, tm=1024, tn=512, tk=None):
    """Tile sizes: as large as sensible, clamped to the (padded) problem."""
    if tk is None:
        tk = 1024 if F >= 1024 else 512       # halve k-steps for deep features
    tm = min(tm, _round_up(B, 16))            # bf16 sublane packing (>= f32's 8)
    tn = min(tn, _round_up(C, 128))           # lane-dense output stores
    tk = min(tk, _round_up(F, 128))
    return tm, tn, tk


# ---------------------------------------------------------------------------
# Pallas kernel: tiled matmul of pre-normalized operands
#   logits[i, j] = sum_k xn[i, k] * wn_T[k, j]
# Output tile is f32 and resident across the reduction axis (index_map
# ignores k), so it doubles as the accumulator -- no scratch needed.
# ---------------------------------------------------------------------------
def _cosine_logits_kernel(x_ref, w_ref, o_ref):
    @pl.when(pl.program_id(2) == 0)
    def _():
        o_ref[...] = jnp.zeros_like(o_ref)

    # bf16 operands, f32 accumulation on the MXU; W is stored k-major so this
    # is a plain A @ B with no transpose inside the kernel.
    o_ref[...] += jnp.dot(x_ref[...], w_ref[...],
                          preferred_element_type=jnp.float32)


def _cosine_logits_call(x_p, w_p, tm, tn, tk):
    """x_p: (Bp, Fp) bf16 normalized;  w_p: (Fp, Cp) bf16 normalized, k-major."""
    Bp, Fp = x_p.shape
    Fp2, Cp = w_p.shape
    assert Fp == Fp2
    grid = (Bp // tm, Cp // tn, Fp // tk)

    return pl.pallas_call(
        _cosine_logits_kernel,
        out_shape=jax.ShapeDtypeStruct((Bp, Cp), jnp.float32),
        grid_spec=pltpu.PrefetchScalarGridSpec(
            num_scalar_prefetch=0,
            grid=grid,
            in_specs=[
                pl.BlockSpec((tm, tk), lambda i, j, k: (i, k)),   # x tile
                pl.BlockSpec((tk, tn), lambda i, j, k: (k, j)),   # W tile (k-major)
            ],
            out_specs=pl.BlockSpec((tm, tn), lambda i, j, k: (i, j)),
        ),
        compiler_params=pltpu.CompilerParams(
            dimension_semantics=("parallel", "parallel", "arbitrary"),
            vmem_limit_bytes=32 * 1024 * 1024,
        ),
    )(x_p, w_p)


# ---------------------------------------------------------------------------
# Operand prep (normalize in f32, cast bf16, pad only if needed)
# ---------------------------------------------------------------------------
def _normalize_rows_f32(a):
    af = a.astype(jnp.float32)
    # 1 / max(||row||, 1e-12) == rsqrt(max(sumsq, 1e-24))  (F.normalize eps).
    inv = lax.rsqrt(jnp.maximum(jnp.sum(af * af, axis=-1, keepdims=True),
                                jnp.float32(1e-24)))
    return af * inv


def prep_weight(W, tn, tk):
    """Normalize rows of W [C, F], cast bf16, transpose to k-major [Fp, Cp]."""
    C, F = W.shape
    wn = _normalize_rows_f32(W).astype(jnp.bfloat16)
    Cp, Fp = _round_up(C, tn), _round_up(F, tk)
    wt = wn.T                                              # (F, C)
    if (Fp, Cp) != (F, C):
        wt = jnp.zeros((Fp, Cp), jnp.bfloat16).at[:F, :C].set(wt)
    return wt


def prep_input(x, tm, tk):
    """Normalize rows of x [B, F], cast bf16, pad to [Bp, Fp] only if needed."""
    B, F = x.shape
    xn = _normalize_rows_f32(x).astype(jnp.bfloat16)
    Bp, Fp = _round_up(B, tm), _round_up(F, tk)
    if (Bp, Fp) != (B, F):
        xn = jnp.zeros((Bp, Fp), jnp.bfloat16).at[:B, :F].set(xn)
    return xn


def adacos_cosine_logits(x, W, *, tm=1024, tn=512, tk=None):
    """Standalone: logits = F.linear(F.normalize(x), F.normalize(W)) -> [B, C] f32."""
    B, F = x.shape
    C, F2 = W.shape
    assert F == F2
    tm, tn, tk = _select_tiles(B, C, F, tm=tm, tn=tn, tk=tk)
    x_p = prep_input(x, tm, tk)
    w_p = prep_weight(W, tn, tk)
    logits_p = _cosine_logits_call(x_p, w_p, tm, tn, tk)
    return logits_p[:B, :C]


# ---------------------------------------------------------------------------
# Module
# ---------------------------------------------------------------------------
class AdaCosPallas:
    """JAX/Pallas port of the PyTorch AdaCos module (forward pass).

    W preprocessing (normalize + bf16 cast + pad + k-major transpose) is
    cached in the module; call set_weight() after any weight update.
    """

    def __init__(self, in_features, out_features, m=0.5, key=None,
                 tm=1024, tn=512, tk=None):
        self.num_features = in_features
        self.n_classes = out_features
        self.m = m
        # Adaptive scale kept as a device scalar (no host syncs in training).
        self.s = jnp.float32(math.sqrt(2.0) * math.log(out_features - 1))
        # TODO(synk): thread `s` as an explicit arg/return for a fully
        # functional, jit-able API (module state mutation won't re-trace).

        self._tm_default, self._tn_default, self._tk_default = tm, tn, tk

        if key is None:
            key = jax.random.PRNGKey(0)
        # xavier_uniform_ for W of shape (out_features, in_features).
        bound = math.sqrt(6.0 / (in_features + out_features))
        W = jax.random.uniform(key, (out_features, in_features),
                               dtype=jnp.float32, minval=-bound, maxval=bound)
        self.set_weight(W)

    def set_weight(self, W):
        """Store raw W and refresh the cached normalized/padded/k-major copy."""
        C, F = W.shape
        assert (C, F) == (self.n_classes, self.num_features)
        self.W = W.astype(jnp.float32)
        # tn/tk depend only on (C, F), so the W cache is batch-independent.
        _, self._tn, self._tk = _select_tiles(16, C, F,
                                              tm=self._tm_default,
                                              tn=self._tn_default,
                                              tk=self._tk_default)
        self._w_prepped = prep_weight(self.W, self._tn, self._tk)

    def __call__(self, x, label=None):
        B, F = x.shape
        assert F == self.num_features
        C = self.n_classes

        tm, _, _ = _select_tiles(B, C, F, tm=self._tm_default,
                                 tn=self._tn, tk=self._tk)
        x_p = prep_input(x, tm, self._tk)
        logits = _cosine_logits_call(x_p, self._w_prepped,
                                     tm, self._tn, self._tk)[:B, :C]
        if label is None:
            return logits

        lbl = label.astype(jnp.int32)

        # Only the true-class angles are needed: gather then arccos on [B].
        logit_true = logits[jnp.arange(B), lbl]
        theta_true = jnp.arccos(jnp.clip(logit_true, -1.0 + 1e-07, 1.0 - 1e-07))

        # no_grad block: adaptive-scale update on tiny intermediates.
        s_old = self.s
        exp_all = jnp.exp(s_old * logits)
        exp_true = jnp.exp(s_old * logit_true)
        B_avg = (jnp.sum(exp_all) - jnp.sum(exp_true)) / B  # sum over non-true
        # torch.median returns the lower middle element for even counts.
        theta_med = jnp.sort(theta_true)[(B - 1) // 2]
        s_new = jnp.log(B_avg) / jnp.cos(
            jnp.minimum(jnp.float32(math.pi / 4.0), theta_med))

        self.s = s_new                      # device array; no host sync
        return s_new * logits


# ---------------------------------------------------------------------------
# Main
# ---------------------------------------------------------------------------
if __name__ == "__main__":
    key = jax.random.PRNGKey(0)
    k_x, k_w, k_l = jax.random.split(key, 3)

    B, F, C = 8, 32, 16  # batch, in_features, out_features (n_classes)

    x = jax.random.normal(k_x, (B, F), dtype=jnp.float32)
    label = jax.random.randint(k_l, (B,), 0, C, dtype=jnp.int32)

    module = AdaCosPallas(in_features=F, out_features=C, m=0.5, key=k_w)

    # Inference path (label=None): cosine logits.
    logits = jax.block_until_ready(module(x))
    # Training path (with label): adaptive-scale output.
    out = jax.block_until_ready(module(x, label))

    assert logits.shape == (B, C)
    assert out.shape == (B, C)

    # Reference check against plain-JAX normalize + matmul (bf16 MXU tolerance).
    x_n = x / jnp.maximum(jnp.linalg.norm(x, axis=-1, keepdims=True), 1e-12)
    w_n = module.W / jnp.maximum(
        jnp.linalg.norm(module.W, axis=-1, keepdims=True), 1e-12)
    ref = x_n @ w_n.T
    assert float(jnp.max(jnp.abs(logits - ref))) < 2e-2
    assert bool(jnp.all(jnp.isfinite(out)))

    # Standalone wrapper path (preps W on the fly) should match the module.
    logits2 = jax.block_until_ready(adacos_cosine_logits(x, module.W))
    assert float(jnp.max(jnp.abs(logits2 - logits))) < 1e-6

    print("KERNEL_OK")
</pallas_src>

<mosaic_0001>
module attributes {stable_mosaic.version = 11 : i64} {
  func.func @_cosine_logits_kernel(%arg0: i32, %arg1: i32, %arg2: i32, %arg3: memref<16x128xbf16, #tpu.memory_space<vmem>>, %arg4: memref<128x128xbf16, #tpu.memory_space<vmem>>, %arg5: memref<16x128xf32, #tpu.memory_space<vmem>>) attributes {dimension_semantics = [#tpu.dimension_semantics<parallel>, #tpu.dimension_semantics<parallel>, #tpu.dimension_semantics<arbitrary>], iteration_bounds = array<i64: 1, 1, 1>, scalar_prefetch = 0 : i64, scratch_operands = 0 : i64, tpu.core_type = #tpu.core_type<tc>, window_params = [{transform_indices = @transform_0, window_bounds = array<i64: 16, 128>}, {transform_indices = @transform_1, window_bounds = array<i64: 128, 128>}, {transform_indices = @transform_2, window_bounds = array<i64: 16, 128>}]} {
    %c0_i32 = arith.constant 0 : i32
    %0 = arith.cmpi eq, %arg2, %c0_i32 : i32
    %1 = arith.extui %0 : i1 to i32
    %c0_i32_0 = arith.constant 0 : i32
    %2 = arith.cmpi ne, %1, %c0_i32_0 : i32
    scf.if %2 {
      %cst_8 = arith.constant 0.000000e+00 : f32
      %9 = vector.broadcast %cst_8 : f32 to vector<16x128xf32>
      %c0_9 = arith.constant 0 : index
      %c0_10 = arith.constant 0 : index
      %10 = vector.load %arg5[%c0_9, %c0_10] : memref<16x128xf32, #tpu.memory_space<vmem>>, vector<16x128xf32>
      tpu.vector_store %arg5[%c0_9, %c0_10], %9 {strides = array<i32>} : memref<16x128xf32, #tpu.memory_space<vmem>>, vector<16x128xf32>,
    } else {
    }
    %c0 = arith.constant 0 : index
    %c0_1 = arith.constant 0 : index
    %3 = vector.load %arg5[%c0, %c0_1] : memref<16x128xf32, #tpu.memory_space<vmem>>, vector<16x128xf32>
    %c0_2 = arith.constant 0 : index
    %c0_3 = arith.constant 0 : index
    %4 = vector.load %arg3[%c0_2, %c0_3] : memref<16x128xbf16, #tpu.memory_space<vmem>>, vector<16x128xbf16>
    %c0_4 = arith.constant 0 : index
    %c0_5 = arith.constant 0 : index
    %5 = vector.load %arg4[%c0_4, %c0_5] : memref<128x128xbf16, #tpu.memory_space<vmem>>, vector<128x128xbf16>
    %cst = arith.constant dense<0.000000e+00> : vector<16x128xf32>
    %6 = tpu.matmul %4, %5, %cst {dimension_numbers = #tpu.dot_dimension_numbers<[1], [0], [0], [1], [0, 0, 1, 1], [], []>} : vector<16x128xbf16>, vector<128x128xbf16>, vector<16x128xf32> -> vector<16x128xf32>
    %7 = arith.addf %3, %6 : vector<16x128xf32>
    %c0_6 = arith.constant 0 : index
    %c0_7 = arith.constant 0 : index
    %8 = vector.load %arg5[%c0_6, %c0_7] : memref<16x128xf32, #tpu.memory_space<vmem>>, vector<16x128xf32>
    tpu.vector_store %arg5[%c0_6, %c0_7], %7 {strides = array<i32>} : memref<16x128xf32, #tpu.memory_space<vmem>>, vector<16x128xf32>,
    return
  }
  func.func @transform_0(%arg0: i32, %arg1: i32, %arg2: i32) -> (i32, i32) {
    %c0_i32 = arith.constant 0 : i32
    return %arg0, %arg2 : i32, i32
  }
  func.func @transform_1(%arg0: i32, %arg1: i32, %arg2: i32) -> (i32, i32) {
    %c0_i32 = arith.constant 0 : i32
    return %arg2, %arg1 : i32, i32
  }
  func.func @transform_2(%arg0: i32, %arg1: i32, %arg2: i32) -> (i32, i32) {
    %c0_i32 = arith.constant 0 : i32
    return %arg0, %arg1 : i32, i32
  }
}

</mosaic_0001>

<bundles_post_ra>
// kernel: tpu_custom_call.1
= control target key start
LH: loop header
LB: loop body
LE: loop exit
PB: predicated region body
PF: predicated region fallthrough
CT: control target
= control target key end

     0   :  { %7 = vsyncpa [#allocation3], 0  ;;  %s339_s0 = inlined_call_operand.hbm [shape: bf16[16,128], index: 0, kind: input, shape index: {}]   ;;  %s340_s1 = inlined_call_operand.hbm [shape: bf16[128,128], index: 1, kind: input, shape index: {}]   ;;  %s341_s2 = inlined_call_operand.hbm [shape: f32[16,128], index: 2, kind: output, shape index: {}]  }
   0x1   :  { %8 = vsyncpa [#allocation6], 0 }
   0x2   :  { %9 = vsyncpa [#allocation4], 0  ;;  %s306_s9 = smov [#allocation2]  }
   0x3   :  { %s15_s10 = sshll.u32 %s306_s9, 4  ;;  %s16_s10 = int_to_ptr.vmem [resolvable:$true] %s15_s10 }
   0x4   :  { %s248_s11 = scalar_lea.vmem %s16_s10, 128  ;;  %p253_p1 = scmp.lt.s32.totalorder %s16_s10, %s16_s10 }
   0x5   :  { %p249_p0 = scmp.ne.s32.totalorder %s16_s10, %s248_s11  ;;  %p254_p2 = scmp.lt.s32.totalorder %s248_s11, %s248_s11 }
   0x7   :  { %p255_p3 = por %p254_p2, %p253_p1 }
   0x9   :  { %p256_p4 = pnand %p255_p3, %p249_p0 }
   0xb   :  { %259 = shalt.err (!%p256_p4)
}
   0xc   :  { %s307_s12 = smov 64   ;;  %s308_s13 = smov 4  }
   0xd   :  { %21 = dma.hbm_to_vmem [thread:$0]  %s339_s0, 128, %s16_s10, [#allocation3], %s307_s12, %s307_s12, %s308_s13  }
   0xe   :  { %s309_s16 = smov [#allocation5]  }
   0xf   :  { %s27_s17 = sshll.u32 %s309_s16, 4  ;;  %s28_s17 = int_to_ptr.vmem [resolvable:$true] %s27_s17 }
  0x10   :  { %s268_s18 = scalar_lea.vmem %s28_s17, 1024  ;;  %p273_p6 = scmp.lt.s32.totalorder %s28_s17, %s28_s17 }
  0x11   :  { %p269_p5 = scmp.ne.s32.totalorder %s28_s17, %s268_s18  ;;  %p274_p7 = scmp.lt.s32.totalorder %s268_s18, %s268_s18 }
  0x13   :  { %p275_p8 = por %p274_p7, %p273_p6 }
  0x15   :  { %p276_p9 = pnand %p275_p8, %p269_p5 }
  0x17   :  { %279 = shalt.err (!%p276_p9)
}
  0x18   :  { %33 = dma.hbm_to_vmem [thread:$0]  %s340_s1, 1024, %s28_s17, [#allocation6], %s307_s12, %s307_s12, %s308_s13  }
  0x19   :  { %300 = dma.done.wait [#allocation3], 128  }
  0x1a   :  { %301 = vsyncadd [#allocation3], 4294967168 }
  0x1b   :  { %302 = dma.done.wait [#allocation6], 1024  }
  0x1c   :  { %303 = vsyncadd [#allocation6], 4294966272  ;;  %v310_v0 = vmov 0.0   ;;  %vm311_vm0 = vmmov 0   ;;  %v231_v1 = vld [vmem:[#allocation5 + $0x38] sm:$0xff]   ;;  %v232_v2 = vld [vmem:[#allocation5 + $0x30] sm:$0xff]  }
  0x1d   :  { %202 = vmatprep.subr.bf16.mxu0 %v310_v0  ;;  %218 = vmatprep.mubr.msk.bf16.mxu0 %vm311_vm0, %v310_v0  ;;  %v233_v3 = vld [vmem:[#allocation5 + $0x28] sm:$0xff]   ;;  %v234_v4 = vld [vmem:[#allocation5 + $0x20] sm:$0xff]   ;;  %v235_v5 = vld [vmem:[#allocation5 + $0x18] sm:$0xff]   ;;  %s312_s0 = smov [#allocation7]  }
  0x1e   :  { %203 = vmatpush3.bf16.msra.mxu0 %v231_v1  ;;  %v236_v6 = vld [vmem:[#allocation5 + $0x10] sm:$0xff]   ;;  %v237_v7 = vld [vmem:[#allocation5 + $0x8] sm:$0xff]   ;;  %v238_v8 = vld [vmem:[#allocation5] sm:$0xff]   ;;  %s171_s1 = sshll.u32 %s312_s0, 4  ;;  %s172_s1 = int_to_ptr.vmem [resolvable:$true] %s171_s1 }
  0x1f   :  { %204 = vmatprep.subr.bf16.mxu0 %v310_v0  ;;  %v239_v9 = vld [vmem:[#allocation2] sm:$0xff]   ;;  %s280_s21 = scalar_lea.vmem %s172_s1, 256  ;;  %p285_p11 = scmp.lt.s32.totalorder %s172_s1, %s172_s1 }
  0x20   :  { %p281_p10 = scmp.ne.s32.totalorder %s172_s1, %s280_s21  ;;  %p286_p12 = scmp.lt.s32.totalorder %s280_s21, %s280_s21 }
  0x22   :  { %205 = vmatpush3.bf16.msra.mxu0 %v232_v2  ;;  %p287_p13 = por %p286_p12, %p285_p11 }
  0x23   :  { %206 = vmatprep.subr.bf16.mxu0 %v310_v0 }
  0x24   :  { %p288_p0 = pnand %p287_p13, %p281_p10 }
  0x26   :  { %207 = vmatpush3.bf16.msra.mxu0 %v233_v3 }
  0x27   :  { %208 = vmatprep.subr.bf16.mxu0 %v310_v0 }
  0x2a   :  { %209 = vmatpush3.bf16.msra.mxu0 %v234_v4 }
  0x2b   :  { %210 = vmatprep.subr.bf16.mxu0 %v310_v0 }
  0x2e   :  { %211 = vmatpush3.bf16.msra.mxu0 %v235_v5 }
  0x2f   :  { %212 = vmatprep.subr.bf16.mxu0 %v310_v0 }
  0x32   :  { %213 = vmatpush3.bf16.msra.mxu0 %v236_v6 }
  0x33   :  { %214 = vmatprep.subr.bf16.mxu0 %v310_v0 }
  0x36   :  { %215 = vmatpush3.bf16.msra.mxu0 %v237_v7 }
  0x37   :  { %216 = vmatprep.subr.bf16.mxu0 %v310_v0 }
  0x3a   :  { %217 = vmatpush3.bf16.msra.mxu0 %v238_v8 }
  0x3d   :  { %219 = vmatmul.mubr.bf16.vlgmr.msra.gmra.mxu0 %v239_v9 }
  0xfd   :  { %v155_v10 = vpop.f32.mrf.mxu0 }
  0xfe   :  { %164 = vst [vmem:[#allocation7] sm:$0xff] %v155_v10 }
  0xff   :  { %v220_v11 = vpop.f32.mrf.mxu0 }
 0x101   :  { %v158_v12 = vpop.f32.mrf.mxu0 }
 0x102   :  { %165 = vst [vmem:[#allocation7 + $0x8] sm:$0xff] %v158_v12 }
 0x103   :  { %v221_v13 = vpop.f32.mrf.mxu0 }
 0x104   :  { %291 = shalt.err (!%p288_p0)
}
 0x105   :  { %s313_s22 = smov 128   ;;  %s314_s23 = smov 8  }
 0x106   :  { %177 = dma.vmem_to_hbm [thread:$0]  %s172_s1, 256, %s341_s2, [#allocation4], %s313_s22, %s313_s22, %s314_s23  }
 0x107   :  { %304 = dma.done.wait [#allocation4], 256  }
 0x108   :  { %305 = vsyncadd [#allocation4], 4294967040 }
 0x109   :  { %181 = vsyncpa [#allocation3], 1 }
 0x10a   :  { %182 = vsyncpa [#allocation6], 1 }
 0x10b   :  { %183 = vsyncpa [#allocation4], 1 }

</bundles_post_ra>
